<compile_context>
chip_gen: v7x
topology: tpu7x:2x2x1
jax: 0.10.0
libtpu: 0.0.40
codegen_flags: <defaults>
</compile_context>

<pallas_src>
import functools
import math

import jax
import jax.numpy as jnp
from jax import lax
from jax.experimental import pallas as pl
from jax.experimental.pallas import tpu as pltpu


_COLS = 1024            # lane-dense last dim (multiple of 128)
_MAX_BLOCK_ROWS = 512   # 512 * 1024 * 4B = 2 MiB per f32 block buffer


def _droppath_kernel(seed_ref, x_ref, o_ref, *, keep_prob):
    block_rows, cols = x_ref.shape
    i = pl.program_id(0)

    # Global element index of every element in this block (row-major over the
    # flattened (rows, cols) view). Unique per element -> mask depends only on
    # (flat position, seed), independent of the tiling choice.
    row_in_blk = lax.broadcasted_iota(jnp.int32, (block_rows, cols), 0)
    col = lax.broadcasted_iota(jnp.int32, (block_rows, cols), 1)
    gid = ((i * block_rows + row_in_blk) * cols + col).astype(jnp.uint32)

    # Mix the seed in, then a splitmix32/lowbias32-style finalizer -> u32 bits.
    key = seed_ref[0].astype(jnp.uint32) * jnp.uint32(0x9E3779B9)
    h = gid ^ key
    h = (h ^ (h >> 16)) * jnp.uint32(0x7FEB352D)
    h = (h ^ (h >> 15)) * jnp.uint32(0x846CA68B)
    h = h ^ (h >> 16)

    # Bernoulli(keep_prob) via integer threshold compare.
    threshold = jnp.uint32(min(int(keep_prob * 4294967296.0), 4294967295))
    keep = h < threshold

    x = x_ref[...]
    inv_keep = jnp.asarray(1.0 / keep_prob, dtype=x.dtype)
    o_ref[...] = jnp.where(keep, x * inv_keep, jnp.zeros_like(x))


def _round_up(n, m):
    return ((n + m - 1) // m) * m


def drop_path(x, drop_prob, seed, training=True):
    """Forward pass of DropPath matching the reference PyTorch module."""
    if drop_prob is None or drop_prob == 0.0 or not training:
        return x

    keep_prob = 1.0 - float(drop_prob)
    orig_shape = x.shape
    total = math.prod(orig_shape)

    cols = _COLS
    rows_needed = (total + cols - 1) // cols
    if rows_needed <= _MAX_BLOCK_ROWS:
        block_rows = max(8, _round_up(rows_needed, 8))   # sublane-aligned
        rows = block_rows                                # single block
    else:
        block_rows = _MAX_BLOCK_ROWS
        rows = _round_up(rows_needed, block_rows)        # even grid, no ragged block

    padded_total = rows * cols
    x_flat = x.reshape(-1)
    if padded_total != total:
        x_flat = jnp.pad(x_flat, (0, padded_total - total))
    x2 = x_flat.reshape(rows, cols)

    seed_arr = jnp.asarray([seed], dtype=jnp.int32)
    grid = (rows // block_rows,)

    out = pl.pallas_call(
        functools.partial(_droppath_kernel, keep_prob=keep_prob),
        out_shape=jax.ShapeDtypeStruct((rows, cols), x.dtype),
        grid=grid,
        in_specs=[
            pl.BlockSpec(memory_space=pltpu.MemorySpace.SMEM),   # seed scalar
            pl.BlockSpec((block_rows, cols), lambda i: (i, 0)),  # x tile
        ],
        out_specs=pl.BlockSpec((block_rows, cols), lambda i: (i, 0)),
        compiler_params=pltpu.CompilerParams(
            dimension_semantics=("parallel",)),
    )(seed_arr, x2)

    return out.reshape(-1)[:total].reshape(orig_shape)


if __name__ == "__main__":
    key = jax.random.PRNGKey(0)
    # Small NCHW input consistent with typical DropPath usage in conv nets.
    x = jax.random.normal(key, (2, 4, 16, 16), dtype=jnp.float32)

    drop_prob = 0.25
    keep_prob = 1.0 - drop_prob

    y = drop_path(x, drop_prob, seed=0, training=True)
    y = jax.block_until_ready(y)

    # Every output element is either 0 or x / keep_prob (up to float tolerance).
    scaled = x / keep_prob
    is_zero = jnp.abs(y) < 1e-6
    is_scaled = jnp.abs(y - scaled) < 1e-4
    assert bool(jnp.all(is_zero | is_scaled)), "DropPath output semantics violated"

    # Keep-rate should be close to keep_prob (2048 elements, generous slack).
    frac_kept = float(jnp.mean((~is_zero).astype(jnp.float32)))
    assert abs(frac_kept - keep_prob) < 0.1, f"unexpected keep rate {frac_kept}"

    # Eval mode / drop_prob == 0 is an identity passthrough.
    y_eval = drop_path(x, drop_prob, seed=0, training=False)
    assert bool(jnp.all(y_eval == x))
    y_nodrop = drop_path(x, 0.0, seed=0, training=True)
    assert bool(jnp.all(y_nodrop == x))

    # bf16 path stays in bf16 (no f32 round-trip inside the kernel).
    y_bf16 = drop_path(x.astype(jnp.bfloat16), drop_prob, seed=1, training=True)
    y_bf16 = jax.block_until_ready(y_bf16)
    assert y_bf16.dtype == jnp.bfloat16 and y_bf16.shape == x.shape

    print("KERNEL_OK")
</pallas_src>

<mosaic_0001>
module attributes {stable_mosaic.version = 11 : i64} {
  func.func @_droppath_kernel(%arg0: i32, %arg1: memref<1xi32, #tpu.memory_space<smem>>, %arg2: memref<8x1024xf32, #tpu.memory_space<vmem>>, %arg3: memref<8x1024xf32, #tpu.memory_space<vmem>>) attributes {dimension_semantics = [#tpu.dimension_semantics<parallel>], iteration_bounds = array<i64: 1>, scalar_prefetch = 0 : i64, scratch_operands = 0 : i64, tpu.core_type = #tpu.core_type<tc>, window_params = [{transform_indices = @transform_0, window_bounds = array<i64: 1>}, {transform_indices = @transform_1, window_bounds = array<i64: 8, 1024>}, {transform_indices = @transform_2, window_bounds = array<i64: 8, 1024>}]} {
    %0 = tpu.iota {dimensions = array<i32: 0>} : vector<8x1024xi32>
    %1 = tpu.iota {dimensions = array<i32: 1>} : vector<8x1024xi32>
    %c8_i32 = arith.constant 8 : i32
    %2 = arith.muli %arg0, %c8_i32 : i32
    %3 = vector.broadcast %2 : i32 to vector<8x1024xi32>
    %4 = arith.addi %3, %0 : vector<8x1024xi32>
    %c1024_i32 = arith.constant 1024 : i32
    %5 = vector.broadcast %c1024_i32 : i32 to vector<8x1024xi32>
    %6 = arith.muli %4, %5 : vector<8x1024xi32>
    %7 = arith.addi %6, %1 : vector<8x1024xi32>
    %c0 = arith.constant 0 : index
    %8 = memref.load %arg1[%c0] : memref<1xi32, #tpu.memory_space<smem>>
    %c-1640531527_i32 = arith.constant -1640531527 : i32
    %9 = arith.muli %8, %c-1640531527_i32 : i32
    %10 = vector.broadcast %9 : i32 to vector<8x1024xi32>
    %11 = arith.xori %7, %10 : vector<8x1024xi32>
    %c16_i32 = arith.constant 16 : i32
    %12 = vector.broadcast %c16_i32 : i32 to vector<8x1024xi32>
    %13 = arith.shrui %11, %12 : vector<8x1024xi32>
    %14 = arith.xori %11, %13 : vector<8x1024xi32>
    %c2146121005_i32 = arith.constant 2146121005 : i32
    %15 = vector.broadcast %c2146121005_i32 : i32 to vector<8x1024xi32>
    %16 = arith.muli %14, %15 : vector<8x1024xi32>
    %c15_i32 = arith.constant 15 : i32
    %17 = vector.broadcast %c15_i32 : i32 to vector<8x1024xi32>
    %18 = arith.shrui %16, %17 : vector<8x1024xi32>
    %19 = arith.xori %16, %18 : vector<8x1024xi32>
    %c-2073254261_i32 = arith.constant -2073254261 : i32
    %20 = vector.broadcast %c-2073254261_i32 : i32 to vector<8x1024xi32>
    %21 = arith.muli %19, %20 : vector<8x1024xi32>
    %c16_i32_0 = arith.constant 16 : i32
    %22 = vector.broadcast %c16_i32_0 : i32 to vector<8x1024xi32>
    %23 = arith.shrui %21, %22 : vector<8x1024xi32>
    %24 = arith.xori %21, %23 : vector<8x1024xi32>
    %c-1073741824_i32 = arith.constant -1073741824 : i32
    %25 = vector.broadcast %c-1073741824_i32 : i32 to vector<8x1024xi32>
    %26 = arith.cmpi ult, %24, %25 : vector<8x1024xi32>
    %c0_1 = arith.constant 0 : index
    %c0_2 = arith.constant 0 : index
    %27 = vector.load %arg2[%c0_1, %c0_2] : memref<8x1024xf32, #tpu.memory_space<vmem>>, vector<8x1024xf32>
    %cst = arith.constant 1.33333337 : f32
    %28 = vector.broadcast %cst : f32 to vector<8x1024xf32>
    %29 = arith.mulf %27, %28 : vector<8x1024xf32>
    %cst_3 = arith.constant 0.000000e+00 : f32
    %30 = vector.broadcast %cst_3 : f32 to vector<8x1024xf32>
    %31 = arith.select %26, %29, %30 : vector<8x1024xi1>, vector<8x1024xf32>
    %c0_4 = arith.constant 0 : index
    %c0_5 = arith.constant 0 : index
    %32 = vector.load %arg3[%c0_4, %c0_5] : memref<8x1024xf32, #tpu.memory_space<vmem>>, vector<8x1024xf32>
    tpu.vector_store %arg3[%c0_4, %c0_5], %31 {strides = array<i32>} : memref<8x1024xf32, #tpu.memory_space<vmem>>, vector<8x1024xf32>,
    return
  }
  func.func @transform_0(%arg0: i32) -> i32 {
    %c0_i32 = arith.constant 0 : i32
    %c0_i32_0 = arith.constant 0 : i32
    return %c0_i32 : i32
  }
  func.func @transform_1(%arg0: i32) -> (i32, i32) {
    %c0_i32 = arith.constant 0 : i32
    %c0_i32_0 = arith.constant 0 : i32
    return %arg0, %c0_i32 : i32, i32
  }
  func.func @transform_2(%arg0: i32) -> (i32, i32) {
    %c0_i32 = arith.constant 0 : i32
    %c0_i32_0 = arith.constant 0 : i32
    return %arg0, %c0_i32 : i32, i32
  }
}

</mosaic_0001>

<bundles_post_ra>
// kernel: tpu_custom_call.1
= control target key start
LH: loop header
LB: loop body
LE: loop exit
PB: predicated region body
PF: predicated region fallthrough
CT: control target
= control target key end

     0   :  { %8 = vsyncpa [#allocation4], 0  ;;  %s290_s0 = inlined_call_operand.<no memory space> [shape: s32[1], index: 0, kind: input, shape index: {}]   ;;  %s291_s1 = inlined_call_operand.hbm [shape: f32[8,1024], index: 1, kind: input, shape index: {}]   ;;  %s292_s2 = inlined_call_operand.hbm [shape: f32[8,1024], index: 2, kind: output, shape index: {}]  }
   0x1   :  { %9 = vsyncpa [#allocation5], 0  ;;  %s228_s9 = smov [#allocation3]   ;;  %s180_s13 = scalar_lea.hbm %s291_s1, 1024 }
   0x2   :  { %s18_s10 = sshll.u32 %s228_s9, 4  ;;  %p181_p0 = scmp.ne.s32.totalorder %s291_s1, %s180_s13  ;;  %s19_s10 = int_to_ptr.vmem [resolvable:$true] %s18_s10 }
   0x3   :  { %p184_p1 = scmp.lt.u32.totalorder %s180_s13, %s291_s1 }
   0x5   :  { %p186_p2 = pnand %p184_p1, %p181_p0 }
   0x7   :  { %189 = shalt.err (!%p186_p2)
}
   0x8   :  { %s190_s18 = scalar_lea.vmem %s19_s10, 1024  ;;  %p195_p4 = scmp.lt.s32.totalorder %s19_s10, %s19_s10 }
   0x9   :  { %p191_p3 = scmp.ne.s32.totalorder %s19_s10, %s190_s18  ;;  %p196_p5 = scmp.lt.s32.totalorder %s190_s18, %s190_s18 }
   0xb   :  { %p197_p6 = por %p196_p5, %p195_p4 }
   0xd   :  { %p198_p7 = pnand %p197_p6, %p191_p3 }
   0xf   :  { %201 = shalt.err (!%p198_p7)
}
  0x10   :  { %21 = dma.hbm_to_vmem [thread:$0]  %s291_s1, 1024, %s19_s10, [#allocation4]  }
  0x11   :  { %224 = dma.done.wait [#allocation4], 1024  }
  0x12   :  { %225 = vsyncadd [#allocation4], 4294966272  ;;  %v25_v0 = vlaneseq  ;;  %s49_s23 = smul.u32 2654435769, %s290_s0  ;;  %v131_v16 = vld [vmem:[#allocation3] sm:$0xff]  ;;  %v132_v17 = vld [vmem:[#allocation3 + $0x8] sm:$0xff] }
  0x13   :  { %v133_v18 = vld [vmem:[#allocation3 + $0x10] sm:$0xff]  ;;  %v260_v23 = vmul.f32 1.3333334, %v131_v16  ;;  %v134_v25 = vld [vmem:[#allocation3 + $0x18] sm:$0xff]  ;;  %v135_v26 = vld [vmem:[#allocation3 + $0x20] sm:$0xff]  ;;  %s229_s0 = smov [#allocation6]  }
  0x14   :  { %v26_v1 = vshrl.u32 %v25_v0, 7  ;;  %v28_v2 = vand.u32 127, %v25_v0  ;;  %v50_v3 = vstv %s49_s23  ;;  %v262_v28 = vmul.f32 1.3333334, %v132_v17  ;;  %v136_v36 = vld [vmem:[#allocation3 + $0x28] sm:$0xff]  ;;  %s169_s1 = sshll.u32 %s229_s0, 4  ;;  %s170_s1 = int_to_ptr.vmem [resolvable:$true] %s169_s1 }
  0x15   :  { %v264_v30 = vmul.f32 1.3333334, %v133_v18  ;;  %v266_v34 = vmul.f32 1.3333334, %v134_v25  ;;  %v268_v39 = vmul.f32 1.3333334, %v135_v26  ;;  %p207_p9 = scmp.lt.s32.totalorder %s170_s1, %s170_s1 }
  0x16   :  { %v39_v4 = vmul.u32 1024, %v26_v1  ;;  %v29_v5 = vadd.s32 128, %v28_v2  ;;  %v30_v6 = vadd.s32 256, %v28_v2  ;;  %v31_v7 = vadd.s32 384, %v28_v2  ;;  %s202_s24 = scalar_lea.vmem %s170_s1, 1024 }
  0x17   :  { %v32_v8 = vadd.s32 512, %v28_v2  ;;  %v33_v9 = vadd.s32 640, %v28_v2  ;;  %v34_v10 = vadd.s32 768, %v28_v2  ;;  %v35_v11 = vadd.s32 896, %v28_v2  ;;  %p203_p8 = scmp.ne.s32.totalorder %s170_s1, %s202_s24  ;;  %p208_p10 = scmp.lt.s32.totalorder %s202_s24, %s202_s24 }
  0x18   :  { %v40_v12 = vadd.s32 %v39_v4, %v28_v2  ;;  %v41_v13 = vadd.s32 %v39_v4, %v29_v5  ;;  %v42_v14 = vadd.s32 %v39_v4, %v30_v6  ;;  %v43_v15 = vadd.s32 %v39_v4, %v31_v7  ;;  %v137_v6 = vld [vmem:[#allocation3 + $0x30] sm:$0xff] }
  0x19   :  { %v44_v19 = vadd.s32 %v39_v4, %v32_v8  ;;  %v45_v20 = vadd.s32 %v39_v4, %v33_v9  ;;  %v46_v21 = vadd.s32 %v39_v4, %v34_v10  ;;  %v47_v27 = vadd.s32 %v39_v4, %v35_v11  ;;  %p209_p11 = por %p208_p10, %p207_p9 }
  0x1a   :  { %v51_v22 = vxor.u32 %v50_v3, %v40_v12  ;;  %v52_v24 = vxor.u32 %v50_v3, %v41_v13  ;;  %v53_v29 = vxor.u32 %v50_v3, %v42_v14  ;;  %v54_v31 = vxor.u32 %v50_v3, %v43_v15 }
  0x1b   :  { %v55_v35 = vxor.u32 %v50_v3, %v44_v19  ;;  %v56_v40 = vxor.u32 %v50_v3, %v45_v20  ;;  %v57_v44 = vxor.u32 %v50_v3, %v46_v21  ;;  %v270_v48 = vmul.f32 1.3333334, %v136_v36  ;;  %p210_p12 = pnand %p209_p11, %p203_p8 }
  0x1c   :  { %v59_v32 = vshrl.u32 %v51_v22, 16  ;;  %v60_v33 = vshrl.u32 %v52_v24, 16  ;;  %v61_v37 = vshrl.u32 %v53_v29, 16  ;;  %v62_v38 = vshrl.u32 %v54_v31, 16 }
  0x1d   :  { %v63_v43 = vshrl.u32 %v55_v35, 16  ;;  %v64_v47 = vshrl.u32 %v56_v40, 16  ;;  %v65_v52 = vshrl.u32 %v57_v44, 16  ;;  %v58_v56 = vxor.u32 %v50_v3, %v47_v27 }
  0x1e   :  { %v67_v41 = vxor.u32 %v59_v32, %v51_v22  ;;  %v68_v42 = vxor.u32 %v60_v33, %v52_v24  ;;  %v69_v45 = vxor.u32 %v61_v37, %v53_v29  ;;  %v70_v46 = vxor.u32 %v62_v38, %v54_v31 }
  0x1f   :  { %v71_v51 = vxor.u32 %v63_v43, %v55_v35  ;;  %v72_v55 = vxor.u32 %v64_v47, %v56_v40  ;;  %v73_v60 = vxor.u32 %v65_v52, %v57_v44  ;;  %v66_v0 = vshrl.u32 %v58_v56, 16 }
  0x20   :  { %v75_v49 = vmul.u32 2146121005, %v67_v41  ;;  %v76_v50 = vmul.u32 2146121005, %v68_v42  ;;  %v145_v17 = vmul.f32 1.3333334, %v137_v6 }
  0x21   :  { %v77_v53 = vmul.u32 2146121005, %v69_v45  ;;  %v78_v54 = vmul.u32 2146121005, %v70_v46  ;;  %v74_v10 = vxor.u32 %v66_v0, %v58_v56 }
  0x22   :  { %v83_v57 = vshrl.u32 %v75_v49, 15  ;;  %v84_v58 = vshrl.u32 %v76_v50, 15  ;;  %v79_v59 = vmul.u32 2146121005, %v71_v51  ;;  %v80_v63 = vmul.u32 2146121005, %v72_v55 }
  0x23   :  { %v85_v61 = vshrl.u32 %v77_v53, 15  ;;  %v86_v62 = vshrl.u32 %v78_v54, 15  ;;  %v81_v5 = vmul.u32 2146121005, %v73_v60  ;;  %v82_v26 = vmul.u32 2146121005, %v74_v10 }
  0x24   :  { %v91_v1 = vxor.u32 %v83_v57, %v75_v49  ;;  %v92_v2 = vxor.u32 %v84_v58, %v76_v50  ;;  %v87_v4 = vshrl.u32 %v79_v59, 15  ;;  %v88_v9 = vshrl.u32 %v80_v63, 15  ;;  %v138_v50 = vld [vmem:[#allocation3 + $0x38] sm:$0xff] }
  0x25   :  { %v93_v7 = vxor.u32 %v85_v61, %v77_v53  ;;  %v94_v8 = vxor.u32 %v86_v62, %v78_v54  ;;  %v89_v13 = vshrl.u32 %v81_v5, 15  ;;  %v90_v37 = vshrl.u32 %v82_v26, 15 }
  0x26   :  { %v99_v11 = vmul.u32 2221713035, %v91_v1  ;;  %v100_v12 = vmul.u32 2221713035, %v92_v2  ;;  %v95_v3 = vxor.u32 %v87_v4, %v79_v59  ;;  %v96_v16 = vxor.u32 %v88_v9, %v80_v63 }
  0x27   :  { %v101_v14 = vmul.u32 2221713035, %v93_v7  ;;  %v102_v15 = vmul.u32 2221713035, %v94_v8  ;;  %v97_v21 = vxor.u32 %v89_v13, %v81_v5  ;;  %v98_v49 = vxor.u32 %v90_v37, %v82_v26 }
  0x28   :  { %v107_v18 = vshrl.u32 %v99_v11, 16  ;;  %v108_v19 = vshrl.u32 %v100_v12, 16  ;;  %v103_v20 = vmul.u32 2221713035, %v95_v3  ;;  %v104_v25 = vmul.u32 2221713035, %v96_v16 }
  0x29   :  { %v109_v22 = vshrl.u32 %v101_v14, 16  ;;  %v110_v24 = vshrl.u32 %v102_v15, 16  ;;  %v105_v32 = vmul.u32 2221713035, %v97_v21 }
  0x2a   :  { %v115_v27 = vxor.u32 %v107_v18, %v99_v11  ;;  %v116_v29 = vxor.u32 %v108_v19, %v100_v12  ;;  %v111_v31 = vshrl.u32 %v103_v20, 16  ;;  %v112_v36 = vshrl.u32 %v104_v25, 16 }
  0x2b   :  { %v117_v33 = vxor.u32 %v109_v22, %v101_v14  ;;  %v118_v35 = vxor.u32 %v110_v24, %v102_v15  ;;  %v113_v40 = vshrl.u32 %v105_v32, 16 }
  0x2c   :  { %vm123_vm0 = vcmp.lt.u32.totalorder %v115_v27, 3221225472  ;;  %vm124_vm1 = vcmp.lt.u32.totalorder %v116_v29, 3221225472  ;;  %v119_v38 = vxor.u32 %v111_v31, %v103_v20  ;;  %v120_v45 = vxor.u32 %v112_v36, %v104_v25 }
  0x2d   :  { %v147_v41 = vsel %vm123_vm0, %v260_v23, 0.0  ;;  %v148_v42 = vsel %vm124_vm1, %v262_v28, 0.0  ;;  %vm125_vm2 = vcmp.lt.u32.totalorder %v117_v33, 3221225472  ;;  %vm126_vm3 = vcmp.lt.u32.totalorder %v118_v35, 3221225472 }
  0x2e   :  { %155 = vst [vmem:[#allocation6] sm:$0xff] %v147_v41  ;;  %156 = vst [vmem:[#allocation6 + $0x8] sm:$0xff] %v148_v42  ;;  %v149_v43 = vsel %vm125_vm2, %v264_v30, 0.0  ;;  %v150_v44 = vsel %vm126_vm3, %v266_v34, 0.0  ;;  %vm127_vm4 = vcmp.lt.u32.totalorder %v119_v38, 3221225472  ;;  %v121_v47 = vxor.u32 %v113_v40, %v105_v32 }
  0x2f   :  { %157 = vst [vmem:[#allocation6 + $0x10] sm:$0xff] %v149_v43  ;;  %158 = vst [vmem:[#allocation6 + $0x18] sm:$0xff] %v150_v44  ;;  %v151_v46 = vsel %vm127_vm4, %v268_v39, 0.0  ;;  %vm128_vm5 = vcmp.lt.u32.totalorder %v120_v45, 3221225472  ;;  %v106_v28 = vmul.u32 2221713035, %v98_v49 }
  0x30   :  { %159 = vst [vmem:[#allocation6 + $0x20] sm:$0xff] %v151_v46  ;;  %v152_v23 = vsel %vm128_vm5, %v270_v48, 0.0  ;;  %vm129_vm6 = vcmp.lt.u32.totalorder %v121_v47, 3221225472  ;;  %v146_v34 = vmul.f32 1.3333334, %v138_v50 }
  0x31   :  { %160 = vst [vmem:[#allocation6 + $0x28] sm:$0xff] %v152_v23  ;;  %v153_v51 = vsel %vm129_vm6, %v145_v17, 0.0  ;;  %v114_v30 = vshrl.u32 %v106_v28, 16 }
  0x32   :  { %161 = vst [vmem:[#allocation6 + $0x30] sm:$0xff] %v153_v51 }
  0x33   :  { %v122_v52 = vxor.u32 %v114_v30, %v106_v28 }
  0x35   :  { %vm130_vm7 = vcmp.lt.u32.totalorder %v122_v52, 3221225472 }
  0x36   :  { %v154_v39 = vsel %vm130_vm7, %v146_v34, 0.0 }
  0x37   :  { %162 = vst [vmem:[#allocation6 + $0x38] sm:$0xff] %v154_v39 }
  0x38   :  { %213 = shalt.err (!%p210_p12)
}
  0x39   :  { %s214_s27 = scalar_lea.hbm %s292_s2, 1024 }
  0x3a   :  { %p215_p13 = scmp.ne.s32.totalorder %s292_s2, %s214_s27  ;;  %p218_p0 = scmp.lt.u32.totalorder %s214_s27, %s292_s2 }
  0x3c   :  { %p220_p1 = pnand %p218_p0, %p215_p13 }
  0x3e   :  { %223 = shalt.err (!%p220_p1)
}
  0x3f   :  { %172 = dma.vmem_to_hbm [thread:$0]  %s170_s1, 1024, %s292_s2, [#allocation5]  }
  0x40   :  { %226 = dma.done.wait [#allocation5], 1024  }
  0x41   :  { %227 = vsyncadd [#allocation5], 4294966272 }
  0x42   :  { %176 = vsyncpa [#allocation4], 1 }
  0x43   :  { %177 = vsyncpa [#allocation5], 1 }

</bundles_post_ra>
